<compile_context>
chip_gen: v5e
topology: v5e:2x2
jax: 0.10.0
libtpu: 0.0.40
codegen_flags: <defaults>
</compile_context>

<pallas_src>
import math

import jax
import jax.numpy as jnp
from jax.experimental import pallas as pl
from jax.experimental.pallas import tpu as pltpu


_HEAD_LANES = 128          # lane-dense head width (cols 0/1 real, rest zero)


def _round_up(x, m):
    return ((x + m - 1) // m) * m


def _sigmoid(x):
    # Explicit form (exp + divide) for guaranteed Mosaic lowering.
    return 1.0 / (1.0 + jnp.exp(-x))


# ----------------------------- kernel body ---------------------------------

def _mpn_kernel(t_ref, wf_ref, w1s_ref, w1c_ref, b1_ref,
                w2_ref, b2_ref, wh_ref, bh_ref, out_ref):
    # GaussianFourierProjection on log(sigma).  Same association as the
    # reference ((log t * W) * 2*pi), done on the VPU in exact f32 -- the sine
    # argument can be ~1e3 rad, so we do not re-associate or push it to the MXU.
    logt = jnp.log(t_ref[...])                                  # [TB, 1]
    x_proj = (logt * wf_ref[...]) * (2.0 * math.pi)             # [TB, nf]
    s = jnp.sin(x_proj)
    c = jnp.cos(x_proj)

    wdt = w1s_ref.dtype
    # concat([sin, cos], -1) @ W1  ==  sin @ W1[:nf] + cos @ W1[nf:]
    # (no XLU lane concat, MXU accumulation handles the sum)
    h = (jnp.dot(s.astype(wdt), w1s_ref[...], preferred_element_type=jnp.float32)
         + jnp.dot(c.astype(wdt), w1c_ref[...], preferred_element_type=jnp.float32)
         + b1_ref[...])                                         # [TB, 4nf]

    # swish, then Linear(4nf -> 4nf)
    h = h * _sigmoid(h)
    h = (jnp.dot(h.astype(w2_ref.dtype), w2_ref[...],
                 preferred_element_type=jnp.float32) + b2_ref[...])

    # Both sigmoid heads fused into one lane-dense (hidden, 128) matmul:
    # column 0 = weight_1, column 1 = sigma_t, columns 2.. are zero padding.
    out_ref[...] = _sigmoid(
        jnp.dot(h.astype(wh_ref.dtype), wh_ref[...],
                preferred_element_type=jnp.float32) + bh_ref[...])
    # TODO(synk): two_weights=True branch (third sigmoid head) not wired up;
    # it would simply occupy column 2 of the padded head (module default is False).


# ----------------------------- wrapper --------------------------------------

def prepare_params(p, *, weights_dtype=jnp.float32):
    """One-time, wrapper-side layout/fusion of the canonical parameters.

    weights_dtype=jnp.bfloat16 halves the per-call weight DMA (mainly a v5e
    win); biases and the Fourier weight stay f32, accumulation stays f32.
    """
    nf = p['w_fourier'].shape[-1]
    head_w = jnp.concatenate([p['w3'], p['w4']], axis=-1)       # [4nf, 2]
    head_b = jnp.concatenate([p['b3'], p['b4']], axis=-1)       # [1, 2]
    pad = _HEAD_LANES - head_w.shape[-1]
    return {
        'wf': p['w_fourier'].reshape(1, nf).astype(jnp.float32),     # [1, nf]
        'w1_sin': p['w1'][:nf].astype(weights_dtype),                # [nf, 4nf]
        'w1_cos': p['w1'][nf:].astype(weights_dtype),                # [nf, 4nf]
        'b1': p['b1'].astype(jnp.float32),                           # [1, 4nf]
        'w2': p['w2'].astype(weights_dtype),                         # [4nf, 4nf]
        'b2': p['b2'].astype(jnp.float32),                           # [1, 4nf]
        'w_head': jnp.pad(head_w, ((0, 0), (0, pad))).astype(weights_dtype),  # [4nf, 128]
        'b_head': jnp.pad(head_b, ((0, 0), (0, pad))).astype(jnp.float32),    # [1, 128]
    }


def marginal_path_nn_forward(t, prep, *, block_b=1024):
    """t: [B] positive floats (sigmas). Returns (weight_1 [B], sigma_t [B])."""
    B = t.shape[0]
    nf = prep['wf'].shape[-1]
    hidden = prep['w2'].shape[0]

    weights = (prep['wf'], prep['w1_sin'], prep['w1_cos'], prep['b1'],
               prep['w2'], prep['b2'], prep['w_head'], prep['b_head'])

    flops = 2 * B * (2 * nf * hidden + hidden * hidden + hidden * _HEAD_LANES)
    transcendentals = B * (1 + 2 * nf + hidden + _HEAD_LANES)   # log, sin/cos, sigmoids
    weight_bytes = sum(int(w.size) * w.dtype.itemsize for w in weights)

    t = t.astype(jnp.float32)

    if B <= 256:
        # Everything fits comfortably in VMEM -> single ungridded block.
        t2 = t.reshape(B, 1)
        vmem = pl.BlockSpec(memory_space=pltpu.MemorySpace.VMEM)
        out = pl.pallas_call(
            _mpn_kernel,
            out_shape=jax.ShapeDtypeStruct((B, _HEAD_LANES), jnp.float32),
            in_specs=[vmem] * (1 + len(weights)),
            out_specs=vmem,
            cost_estimate=pl.CostEstimate(
                flops=flops, transcendentals=transcendentals,
                bytes_accessed=weight_bytes + 4 * B * (1 + _HEAD_LANES)),
        )(t2, *weights)
    else:
        # 1-D "parallel" grid over the batch.  TB chosen so there are always
        # >= 2 blocks (both v7x TensorCores get work) and TB is a multiple of
        # 256 (MXU-M on v6e/v7x, also a multiple of 128 for v5e).
        block_b = max(256, _round_up(block_b, 256))
        TB = min(block_b, max(256, _round_up(pl.cdiv(B, 2), 256)))
        nblocks = pl.cdiv(B, TB)
        Bp = nblocks * TB
        # Pad with t=1.0 (log(1)=0) -> padded rows are well-defined and harmless;
        # jnp.pad fuses to one cheap op (no ones+scatter launch).
        t2 = jnp.pad(t, (0, Bp - B), constant_values=1.0).reshape(Bp, 1)
        # Weights are grid-invariant: constant index_map + single-buffered.
        w_specs = [pl.BlockSpec(w.shape, lambda i: (0, 0),
                                pipeline_mode=pl.Buffered(1))
                   for w in weights]
        out = pl.pallas_call(
            _mpn_kernel,
            out_shape=jax.ShapeDtypeStruct((Bp, _HEAD_LANES), jnp.float32),
            grid=(nblocks,),
            in_specs=[pl.BlockSpec((TB, 1), lambda i: (i, 0))] + w_specs,
            out_specs=pl.BlockSpec((TB, _HEAD_LANES), lambda i: (i, 0)),
            compiler_params=pltpu.CompilerParams(
                dimension_semantics=("parallel",)),
            cost_estimate=pl.CostEstimate(
                flops=flops, transcendentals=transcendentals,
                bytes_accessed=weight_bytes + 4 * Bp * (1 + _HEAD_LANES)),
        )(t2, *weights)

    return out[:B, 0], out[:B, 1]


# ---------------- parameter init (deterministic, synthetic) ----------------

def _variance_scaling_uniform(key, shape, fan_in, fan_out, scale=1.0):
    # score_sde default_init(): variance_scaling(1., 'fan_avg', 'uniform')
    denom = (fan_in + fan_out) / 2.0
    variance = scale / denom
    limit = math.sqrt(3.0 * variance)
    return jax.random.uniform(key, shape, jnp.float32, -limit, limit)


def init_params(key, nf=32, fourier_scale=16.0):
    ks = jax.random.split(key, 6)
    embed_dim = 2 * nf
    hidden = 4 * nf
    return {
        # GaussianFourierProjection weight W ~ N(0,1) * scale
        'w_fourier': jax.random.normal(ks[0], (1, nf), jnp.float32) * fourier_scale,
        # Linear(embed_dim, 4nf)
        'w1': _variance_scaling_uniform(ks[1], (embed_dim, hidden), embed_dim, hidden),
        'b1': jnp.zeros((1, hidden), jnp.float32),
        # Linear(4nf, 4nf)
        'w2': _variance_scaling_uniform(ks[2], (hidden, hidden), hidden, hidden),
        'b2': jnp.zeros((1, hidden), jnp.float32),
        # Linear(4nf, 1)  -> weight_1 head
        'w3': _variance_scaling_uniform(ks[3], (hidden, 1), hidden, 1),
        'b3': jnp.zeros((1, 1), jnp.float32),
        # Linear(4nf, 1)  -> sigma_t head
        'w4': _variance_scaling_uniform(ks[4], (hidden, 1), hidden, 1),
        'b4': jnp.zeros((1, 1), jnp.float32),
    }


# ---------------- pure-JAX reference (faithful to the torch module) ---------

def reference_forward(t, p):
    logt = jnp.log(t)[:, None]
    x_proj = logt * p['w_fourier'] * (2.0 * math.pi)
    temb = jnp.concatenate([jnp.sin(x_proj), jnp.cos(x_proj)], axis=-1)
    h = temb @ p['w1'] + p['b1']
    h = h * jax.nn.sigmoid(h)
    h = h @ p['w2'] + p['b2']
    w1 = jax.nn.sigmoid(h @ p['w3'] + p['b3'])
    s = jax.nn.sigmoid(h @ p['w4'] + p['b4'])
    return w1[:, 0], s[:, 0]


if __name__ == "__main__":
    key = jax.random.PRNGKey(0)
    k_param, k_t1, k_t2 = jax.random.split(key, 3)

    nf = 32          # small nf for the test (module default is 128)
    params = init_params(k_param, nf=nf, fourier_scale=16.0)
    prep = prepare_params(params)

    # Tolerance note: the sine argument is O(1e3) radians (fourier_scale=16),
    # so fp32 range-reduction / matmul-precision differences between the XLA
    # reference and the Mosaic kernel can reach ~1e-3 on these sigmoid outputs;
    # real bugs produce O(0.1) errors, so 2e-3 cleanly separates the two.
    ATOL = RTOL = 2e-3

    # ---- small batch: single ungridded all-in-VMEM block ----
    t_small = jax.random.uniform(k_t1, (8,), jnp.float32, 0.01, 1.0)
    w1_k, sig_k = marginal_path_nn_forward(t_small, prep)
    jax.block_until_ready((w1_k, sig_k))
    w1_r, sig_r = reference_forward(t_small, params)
    assert w1_k.shape == (8,) and sig_k.shape == (8,)
    assert jnp.allclose(w1_k, w1_r, atol=ATOL, rtol=RTOL), float(jnp.max(jnp.abs(w1_k - w1_r)))
    assert jnp.allclose(sig_k, sig_r, atol=ATOL, rtol=RTOL), float(jnp.max(jnp.abs(sig_k - sig_r)))

    # ---- larger batch: 1-D parallel batch grid, >=2 blocks, padded last block ----
    t_big = jax.random.uniform(k_t2, (600,), jnp.float32, 0.01, 1.0)
    w1_kb, sig_kb = marginal_path_nn_forward(t_big, prep)
    jax.block_until_ready((w1_kb, sig_kb))
    w1_rb, sig_rb = reference_forward(t_big, params)
    assert w1_kb.shape == (600,) and sig_kb.shape == (600,)
    assert jnp.allclose(w1_kb, w1_rb, atol=ATOL, rtol=RTOL), float(jnp.max(jnp.abs(w1_kb - w1_rb)))
    assert jnp.allclose(sig_kb, sig_rb, atol=ATOL, rtol=RTOL), float(jnp.max(jnp.abs(sig_kb - sig_rb)))

    print("KERNEL_OK")
</pallas_src>

<mosaic_0001>
module attributes {stable_mosaic.version = 11 : i64} {
  func.func @_mpn_kernel(%arg0: memref<8x1xf32, #tpu.memory_space<vmem>>, %arg1: memref<1x32xf32, #tpu.memory_space<vmem>>, %arg2: memref<32x128xf32, #tpu.memory_space<vmem>>, %arg3: memref<32x128xf32, #tpu.memory_space<vmem>>, %arg4: memref<1x128xf32, #tpu.memory_space<vmem>>, %arg5: memref<128x128xf32, #tpu.memory_space<vmem>>, %arg6: memref<1x128xf32, #tpu.memory_space<vmem>>, %arg7: memref<128x128xf32, #tpu.memory_space<vmem>>, %arg8: memref<1x128xf32, #tpu.memory_space<vmem>>, %arg9: memref<8x128xf32, #tpu.memory_space<vmem>>) attributes {dimension_semantics = [], scalar_prefetch = 0 : i64, scratch_operands = 0 : i64, tpu.core_type = #tpu.core_type<tc>} {
    %c0 = arith.constant 0 : index
    %c0_0 = arith.constant 0 : index
    %0 = vector.load %arg0[%c0, %c0_0] : memref<8x1xf32, #tpu.memory_space<vmem>>, vector<8x1xf32>
    %1 = math.log %0 : vector<8x1xf32>
    %c0_1 = arith.constant 0 : index
    %c0_2 = arith.constant 0 : index
    %2 = vector.load %arg1[%c0_1, %c0_2] : memref<1x32xf32, #tpu.memory_space<vmem>>, vector<1x32xf32>
    %3 = vector.broadcast %1 : vector<8x1xf32> to vector<8x32xf32>
    %4 = vector.broadcast %2 : vector<1x32xf32> to vector<8x32xf32>
    %5 = arith.mulf %3, %4 : vector<8x32xf32>
    %cst = arith.constant 6.28318548 : f32
    %6 = vector.broadcast %cst : f32 to vector<8x32xf32>
    %7 = arith.mulf %5, %6 : vector<8x32xf32>
    %8 = math.sin %7 : vector<8x32xf32>
    %9 = math.cos %7 : vector<8x32xf32>
    %c0_3 = arith.constant 0 : index
    %c0_4 = arith.constant 0 : index
    %10 = vector.load %arg2[%c0_3, %c0_4] : memref<32x128xf32, #tpu.memory_space<vmem>>, vector<32x128xf32>
    %cst_5 = arith.constant dense<0.000000e+00> : vector<8x128xf32>
    %11 = tpu.matmul %8, %10, %cst_5 {dimension_numbers = #tpu.dot_dimension_numbers<[1], [0], [0], [1], [0, 0, 1, 1], [], []>} : vector<8x32xf32>, vector<32x128xf32>, vector<8x128xf32> -> vector<8x128xf32>
    %c0_6 = arith.constant 0 : index
    %c0_7 = arith.constant 0 : index
    %12 = vector.load %arg3[%c0_6, %c0_7] : memref<32x128xf32, #tpu.memory_space<vmem>>, vector<32x128xf32>
    %cst_8 = arith.constant dense<0.000000e+00> : vector<8x128xf32>
    %13 = tpu.matmul %9, %12, %cst_8 {dimension_numbers = #tpu.dot_dimension_numbers<[1], [0], [0], [1], [0, 0, 1, 1], [], []>} : vector<8x32xf32>, vector<32x128xf32>, vector<8x128xf32> -> vector<8x128xf32>
    %14 = arith.addf %11, %13 : vector<8x128xf32>
    %c0_9 = arith.constant 0 : index
    %c0_10 = arith.constant 0 : index
    %15 = vector.load %arg4[%c0_9, %c0_10] : memref<1x128xf32, #tpu.memory_space<vmem>>, vector<1x128xf32>
    %16 = vector.broadcast %15 : vector<1x128xf32> to vector<8x128xf32>
    %17 = arith.addf %14, %16 : vector<8x128xf32>
    %cst_11 = arith.constant 0.000000e+00 : f32
    %18 = vector.broadcast %cst_11 : f32 to vector<8x128xf32>
    %19 = arith.subf %18, %17 : vector<8x128xf32>
    %20 = math.exp %19 : vector<8x128xf32>
    %cst_12 = arith.constant 1.000000e+00 : f32
    %21 = vector.broadcast %cst_12 : f32 to vector<8x128xf32>
    %22 = arith.addf %21, %20 : vector<8x128xf32>
    %cst_13 = arith.constant 1.000000e+00 : f32
    %23 = vector.broadcast %cst_13 : f32 to vector<8x128xf32>
    %24 = arith.divf %23, %22 : vector<8x128xf32>
    %25 = arith.mulf %17, %24 : vector<8x128xf32>
    %c0_14 = arith.constant 0 : index
    %c0_15 = arith.constant 0 : index
    %26 = vector.load %arg5[%c0_14, %c0_15] : memref<128x128xf32, #tpu.memory_space<vmem>>, vector<128x128xf32>
    %cst_16 = arith.constant dense<0.000000e+00> : vector<8x128xf32>
    %27 = tpu.matmul %25, %26, %cst_16 {dimension_numbers = #tpu.dot_dimension_numbers<[1], [0], [0], [1], [0, 0, 1, 1], [], []>} : vector<8x128xf32>, vector<128x128xf32>, vector<8x128xf32> -> vector<8x128xf32>
    %c0_17 = arith.constant 0 : index
    %c0_18 = arith.constant 0 : index
    %28 = vector.load %arg6[%c0_17, %c0_18] : memref<1x128xf32, #tpu.memory_space<vmem>>, vector<1x128xf32>
    %29 = vector.broadcast %28 : vector<1x128xf32> to vector<8x128xf32>
    %30 = arith.addf %27, %29 : vector<8x128xf32>
    %c0_19 = arith.constant 0 : index
    %c0_20 = arith.constant 0 : index
    %31 = vector.load %arg7[%c0_19, %c0_20] : memref<128x128xf32, #tpu.memory_space<vmem>>, vector<128x128xf32>
    %cst_21 = arith.constant dense<0.000000e+00> : vector<8x128xf32>
    %32 = tpu.matmul %30, %31, %cst_21 {dimension_numbers = #tpu.dot_dimension_numbers<[1], [0], [0], [1], [0, 0, 1, 1], [], []>} : vector<8x128xf32>, vector<128x128xf32>, vector<8x128xf32> -> vector<8x128xf32>
    %c0_22 = arith.constant 0 : index
    %c0_23 = arith.constant 0 : index
    %33 = vector.load %arg8[%c0_22, %c0_23] : memref<1x128xf32, #tpu.memory_space<vmem>>, vector<1x128xf32>
    %34 = vector.broadcast %33 : vector<1x128xf32> to vector<8x128xf32>
    %35 = arith.addf %32, %34 : vector<8x128xf32>
    %cst_24 = arith.constant 0.000000e+00 : f32
    %36 = vector.broadcast %cst_24 : f32 to vector<8x128xf32>
    %37 = arith.subf %36, %35 : vector<8x128xf32>
    %38 = math.exp %37 : vector<8x128xf32>
    %cst_25 = arith.constant 1.000000e+00 : f32
    %39 = vector.broadcast %cst_25 : f32 to vector<8x128xf32>
    %40 = arith.addf %39, %38 : vector<8x128xf32>
    %cst_26 = arith.constant 1.000000e+00 : f32
    %41 = vector.broadcast %cst_26 : f32 to vector<8x128xf32>
    %42 = arith.divf %41, %40 : vector<8x128xf32>
    %c0_27 = arith.constant 0 : index
    %c0_28 = arith.constant 0 : index
    %43 = vector.load %arg9[%c0_27, %c0_28] : memref<8x128xf32, #tpu.memory_space<vmem>>, vector<8x128xf32>
    tpu.vector_store %arg9[%c0_27, %c0_28], %42 {strides = array<i32>} : memref<8x128xf32, #tpu.memory_space<vmem>>, vector<8x128xf32>,
    return
  }
}

</mosaic_0001>

<bundles_post_ra>
// kernel: tpu_custom_call.1
= control target key start
LH: loop header
LB: loop body
LE: loop exit
PB: predicated region body
PF: predicated region fallthrough
CT: control target
= control target key end

     0   :  { %14 = vsyncpa [#allocation3], 0  ;;  %s936_s0 = inlined_call_operand.vmem [shape: f32[8,1], index: 0, kind: input, shape index: {}]   ;;  %s937_s1 = inlined_call_operand.vmem [shape: f32[1,32], index: 1, kind: input, shape index: {}]   ;;  %s938_s2 = inlined_call_operand.hbm [shape: f32[32,128], index: 2, kind: input, shape index: {}]   ;;  %s939_s3 = inlined_call_operand.hbm [shape: f32[32,128], index: 3, kind: input, shape index: {}]   ;;  %s940_s4 = inlined_call_operand.vmem [shape: f32[1,128], index: 4, kind: input, shape index: {}]   ;;  %s941_s5 = inlined_call_operand.hbm [shape: f32[128,128], index: 5, kind: input, shape index: {}]   ;;  %s942_s6 = inlined_call_operand.vmem [shape: f32[1,128], index: 6, kind: input, shape index: {}]   ;;  %s943_s7 = inlined_call_operand.hbm [shape: f32[128,128], index: 7, kind: input, shape index: {}]   ;;  %s944_s8 = inlined_call_operand.vmem [shape: f32[1,128], index: 8, kind: input, shape index: {}]   ;;  %s945_s9 = inlined_call_operand.hbm [shape: f32[8,128], index: 9, kind: output, shape index: {}]  }
   0x1   :  { %15 = vsyncpa [#allocation6], 0 }
   0x2   :  { %16 = vsyncpa [#allocation9], 0 }
   0x3   :  { %17 = vsyncpa [#allocation4], 0  ;;  %s39_s11 = sshll.u32 %s939_s3, 4  ;;  %s783_s12 = smov [#allocation5]   ;;  %s40_s11 = int_to_ptr.hbm [resolvable:$true] %s39_s11 }
   0x4   :  { %s41_s13 = sshll.u32 %s783_s12, 4  ;;  %s26_s16 = sshll.u32 %s938_s2, 4  ;;  %s42_s13 = int_to_ptr.vmem [resolvable:$true] %s41_s13  ;;  %s27_s16 = int_to_ptr.hbm [resolvable:$true] %s26_s16 }
   0x5   :  { %s784_s17 = smov 128   ;;  %s785_s18 = smov 8  }
   0x6   :  { %47 = dma.hbm_to_vmem [thread:$0]  %s40_s11, 512, %s42_s13, [#allocation6], %s784_s17, %s784_s17, %s785_s18  }
   0x7   :  { %s786_s19 = smov [#allocation2]   ;;  %s54_s23 = sshll.u32 %s941_s5, 4  ;;  %s55_s23 = int_to_ptr.hbm [resolvable:$true] %s54_s23 }
   0x8   :  { %s28_s20 = sshll.u32 %s786_s19, 4  ;;  %s69_s25 = sshll.u32 %s943_s7, 4  ;;  %s29_s20 = int_to_ptr.vmem [resolvable:$true] %s28_s20  ;;  %s70_s25 = int_to_ptr.hbm [resolvable:$true] %s69_s25 }
   0x9   :  { %34 = dma.hbm_to_vmem [thread:$0]  %s27_s16, 512, %s29_s20, [#allocation3], %s784_s17, %s784_s17, %s785_s18  }
   0xa   :  { %s787_s26 = smov [#allocation7]   ;;  %s788_s2 = smov [#allocation8]  }
   0xb   :  { %s56_s27 = sshll.u32 %s787_s26, 4  ;;  %s71_s28 = sshll.u32 %s788_s2, 4  ;;  %s57_s27 = int_to_ptr.vmem [resolvable:$true] %s56_s27  ;;  %s72_s28 = int_to_ptr.vmem [resolvable:$true] %s71_s28 }
   0xc   :  { %62 = dma.hbm_to_vmem [thread:$0]  %s55_s23, 2048, %s57_s27, [#allocation6], %s784_s17, %s784_s17, %s785_s18  }
   0xd   :  { %77 = dma.hbm_to_vmem [thread:$0]  %s70_s25, 2048, %s72_s28, [#allocation9], %s784_s17, %s784_s17, %s785_s18  }
   0xe   :  { %775 = dma.done.wait [#allocation3], 512  }
   0xf   :  { %776 = vsyncadd [#allocation3], 4294966784 }
  0x10   :  { %777 = dma.done.wait [#allocation6], 2560  }
  0x11   :  { %778 = vsyncadd [#allocation6], 4294964736 }
  0x12   :  { %779 = dma.done.wait [#allocation9], 2048  }
  0x13   :  { %780 = vsyncadd [#allocation9], 4294965248  ;;  %v789_v0 = vmov 0   ;;  %v96_v1 = vld [vmem:[%s936_s0] sm:$0xff]  ;;  %v426_v4 = vld [vmem:[#allocation5 + $0x18] sm:$0xff] }
  0x14   :  { %640 = vset.pattern.permute.xlu0 %v789_v0  ;;  %645 = vlog2.f32 %v96_v1  ;;  %v422_v5 = vld [vmem:[#allocation2 + $0x18] sm:$0xff]  ;;  %v425_v6 = vld [vmem:[#allocation5 + $0x10] sm:$0xff]  ;;  %443 = vmatpush.msra.mxu0 %v426_v4  ;;  %v424_v8 = vld [vmem:[#allocation5 + $0x8] sm:$0xff]  ;;  %v790_v27 = vmov 2102212464  }
  0x15   :  { %466 = vmatpush.msra.mxu1 %v422_v5  ;;  %v421_v7 = vld [vmem:[#allocation2 + $0x10] sm:$0xff]  ;;  %v420_v9 = vld [vmem:[#allocation2 + $0x8] sm:$0xff]  ;;  %v423_v10 = vld [vmem:[#allocation5] sm:$0xff]  ;;  %v791_v29 = vmov 920167782  }
  0x16   :  { %444 = vmatpush.msra.mxu0 %v425_v6  ;;  %v419_v11 = vld [vmem:[#allocation2] sm:$0xff]  ;;  %v792_v32 = vmov 1326507024   ;;  %v793_v34 = vmov 683565275  }
  0x17   :  { %467 = vmatpush.msra.mxu1 %v421_v7  ;;  %v641_v12 = vld [vmem:[%s937_s1] ss:$0 sm:$0xff]  ;;  %v794_v36 = vmov 2475754826   ;;  %v795_v39 = vmov 2131351028  }
  0x18   :  { %445 = vmatpush.msra.mxu0 %v424_v8 }
  0x19   :  { %468 = vmatpush.msra.mxu1 %v420_v9 }
  0x1a   :  { %v646_v2 = vpop.eup %645  ;;  %446 = vmatpush.msra.mxu0 %v423_v10 }
  0x1b   :  { %v98_v3 = vmul.f32 0.6931472, %v646_v2  ;;  %469 = vmatpush.msra.mxu1 %v419_v11 }
  0x1d   :  { %102 = vperm.xlu0 %640, %v98_v3  }
  0x8f   :  { %v103_v13 = vpop.permute.xlu0 %102 }
  0x90   :  { %v108_v14 = vmul.f32 %v641_v12, %v103_v13 }
  0x92   :  { %v866_v15 = vmul.f32 6.2831855, %v108_v14 }
  0x94   :  { %v113_v16 = vand.u32 2139095040, %v866_v15  ;;  %v110_v19 = vand.u32 2147483647, %v866_v15  ;;  %vm112_vm12 = vcmp.lt.s32.totalorder %v866_v15, 0 }
  0x96   :  { %v114_v17 = vshrl.u32 %v113_v16, 23  ;;  %v117_v21 = vand.u32 8388607, %v110_v19  ;;  %vm111_vm13 = vcmp.le.f32.partialorder %v110_v19, 0.7853982 }
  0x98   :  { %v618_v18 = vadd.s32 4294967169, %v114_v17  ;;  %v118_v25 = vor.u32 8388608, %v117_v21 }
  0x9a   :  { %v120_v20 = vadd.s32 1, %v618_v18  ;;  %v881_v46 = vshll.u32 %v118_v25, 8 }
  0x9c   :  { %vm121_vm0 = vcmp.gt.s32.totalorder %v120_v20, 0  ;;  %v159_v56 = vand.u32 65535, %v881_v46  ;;  %v160_v58 = vshrl.u32 %v881_v46, 16 }
  0x9d   :  { %v122_v22 = vsel %vm121_vm0, %v120_v20, 0 }
  0x9e   :  { %v124_v23 = vand.u32 31, %v122_v22  ;;  %v874_v26 = vshrl.u32 %v122_v22, 5 }
  0xa0   :  { %v872_v24 = vsub.s32 32, %v124_v23  ;;  %v136_v28 = vshll.u32 %v790_v27, %v124_v23  ;;  %v139_v30 = vshll.u32 %v791_v29, %v124_v23  ;;  %v127_v35 = vshll.u32 %v793_v34, %v124_v23 }
  0xa1   :  { %v130_v38 = vshll.u32 %v794_v36, %v124_v23  ;;  %v133_v41 = vshll.u32 %v795_v39, %v124_v23  ;;  %vm145_vm1 = vcmp.lt.s32.totalorder %v874_v26, 4  ;;  %vm142_vm2 = vcmp.lt.s32.totalorder %v874_v26, 1 }
  0xa2   :  { %v137_v31 = vshrl.u32 %v791_v29, %v872_v24  ;;  %v140_v33 = vshrl.u32 %v792_v32, %v872_v24  ;;  %v128_v37 = vshrl.u32 %v794_v36, %v872_v24  ;;  %v131_v40 = vshrl.u32 %v795_v39, %v872_v24 }
  0xa3   :  { %v134_v42 = vshrl.u32 %v790_v27, %v872_v24  ;;  %vm144_vm3 = vcmp.lt.s32.totalorder %v874_v26, 3  ;;  %vm143_vm4 = vcmp.lt.s32.totalorder %v874_v26, 2  ;;  %v126_v20 = vshrl.u32 %v793_v34, %v872_v24 }
  0xa4   :  { %v138_v43 = vor.u32 %v137_v31, %v136_v28  ;;  %v141_v44 = vor.u32 %v140_v33, %v139_v30  ;;  %v129_v45 = vor.u32 %v128_v37, %v127_v35  ;;  %v132_v47 = vor.u32 %v131_v40, %v130_v38 }
  0xa5   :  { %v135_v48 = vor.u32 %v134_v42, %v133_v41 }
  0xa6   :  { %v151_v49 = vsel %vm145_vm1, %v138_v43, 920167782  ;;  %v155_v50 = vsel %vm145_vm1, %v141_v44, 1326507024  ;;  %v150_v51 = vsel %vm142_vm2, %v129_v45, %v132_v47  ;;  %v146_v28 = vsel %vm142_vm2, %v126_v20, %v129_v45 }
  0xa7   :  { %v152_v52 = vsel %vm144_vm3, %v135_v48, %v151_v49  ;;  %v154_v53 = vsel %vm142_vm2, %v132_v47, %v135_v48  ;;  %v156_v55 = vsel %vm144_vm3, %v138_v43, %v155_v50  ;;  %v147_v16 = vsel %vm145_vm1, %v135_v48, 2102212464 }
  0xa8   :  { %v153_v54 = vsel %vm143_vm4, %v150_v51, %v152_v52  ;;  %v157_v57 = vsel %vm143_vm4, %v154_v53, %v156_v55  ;;  %v148_v29 = vsel %vm144_vm3, %v132_v47, %v147_v16  ;;  %vm427_vm1 = vcmask 261120  }
  0xa9   :  { %v183_v59 = vand.u32 65535, %v153_v54  ;;  %v184_v60 = vshrl.u32 %v153_v54, 16  ;;  %v161_v61 = vand.u32 65535, %v157_v57  ;;  %v162_v62 = vshrl.u32 %v157_v57, 16 }
  0xaa   :  { %v149_v34 = vsel %vm143_vm4, %v146_v28, %v148_v29 }
  0xab   :  { %v186_v63 = vmul.u32 %v184_v60, %v159_v56  ;;  %v187_v1 = vmul.u32 %v183_v59, %v160_v58  ;;  %v164_v2 = vmul.u32 %v162_v62, %v159_v56  ;;  %v165_v3 = vmul.u32 %v161_v61, %v160_v58 }
  0xac   :  { %v185_v4 = vmul.u32 %v183_v59, %v159_v56  ;;  %v163_v6 = vmul.u32 %v161_v61, %v159_v56  ;;  %v188_v8 = vmul.u32 %v184_v60, %v160_v58  ;;  %v166_v9 = vmul.u32 %v162_v62, %v160_v58 }
  0xad   :  { %v189_v5 = vshll.u32 %v186_v63, 16  ;;  %v167_v7 = vshll.u32 %v164_v2, 16  ;;  %v191_v10 = vshll.u32 %v187_v1, 16  ;;  %v169_v12 = vshll.u32 %v165_v3, 16 }
  0xae   :  { %v190_v25 = vshrl.u32 %v186_v63, 16  ;;  %v168_v30 = vshrl.u32 %v164_v2, 16  ;;  %v192_v32 = vshrl.u32 %v187_v1, 16  ;;  %v170_v35 = vshrl.u32 %v165_v3, 16 }
  0xaf   :  { %vm193_vm5 = vc.u32 %v185_v4, %v189_v5  ;;  %v195_v11 = vadd.s32 %v189_v5, %v185_v4  ;;  %vm171_vm6 = vc.u32 %v163_v6, %v167_v7  ;;  %v173_v13 = vadd.s32 %v167_v7, %v163_v6 }
  0xb0   :  { %v194_v14 = vsel %vm193_vm5, 1, %v789_v0  ;;  %v172_v17 = vsel %vm171_vm6, 1, %v789_v0  ;;  %v203_v39 = vmul.u32 %v881_v46, %v149_v34  ;;  %vm253_vm5 = vweird.f32 %v866_v15  ;;  %v513_v34 = vld [vmem:[#allocation7 + $0x70] sm:$0xff] }
  0xb1   :  { %v196_v18 = vadd.s32 %v194_v14, %v188_v8  ;;  %vm197_vm7 = vc.u32 %v195_v11, %v191_v10  ;;  %v174_v21 = vadd.s32 %v172_v17, %v166_v9  ;;  %vm175_vm8 = vc.u32 %v173_v13, %v169_v12 }
  0xb2   :  { %v198_v22 = vsel %vm197_vm7, 1, %v789_v0  ;;  %v176_v23 = vsel %vm175_vm8, 1, %v789_v0  ;;  %v199_v0 = vadd.s32 %v195_v11, %v191_v10 }
  0xb3   :  { %v200_v27 = vadd.s32 %v198_v22, %v196_v18  ;;  %v178_v31 = vadd.s32 %v176_v23, %v174_v21 }
  0xb5   :  { %v201_v33 = vadd.s32 %v200_v27, %v190_v25  ;;  %v179_v24 = vadd.s32 %v178_v31, %v168_v30 }
  0xb7   :  { %v202_v36 = vadd.s32 %v201_v33, %v192_v32  ;;  %v180_v37 = vadd.s32 %v179_v24, %v170_v35  ;;  %v514_v24 = vld [vmem:[#allocation7 + $0x78] sm:$0xff] }
  0xb8   :  { %519 = vmatpush.msra.mxu2 %v514_v24 }
  0xb9   :  { %v206_v38 = vadd.s32 1, %v202_v36  ;;  %vm205_vm9 = vc.u32 %v180_v37, %v199_v0  ;;  %v204_v51 = vadd.s32 %v199_v0, %v180_v37  ;;  %v511_v37 = vld [vmem:[#allocation7 + $0x60] sm:$0xff]  ;;  %v510_v0 = vld [vmem:[#allocation7 + $0x58] sm:$0xff] }
  0xba   :  { %520 = vmatpush.msra.mxu2 %v513_v34 }
  0xbb   :  { %v207_v40 = vsel %vm205_vm9, %v206_v38, %v202_v36  ;;  %v512_v36 = vld [vmem:[#allocation7 + $0x68] sm:$0xff]  ;;  %v509_v38 = vld [vmem:[#allocation7 + $0x50] sm:$0xff] }
  0xbc   :  { %v208_v41 = vadd.s32 %v207_v40, %v203_v39  ;;  %521 = vmatpush.msra.mxu2 %v512_v36  ;;  %v508_v39 = vld [vmem:[#allocation7 + $0x48] sm:$0xff]  ;;  %v506_v40 = vld [vmem:[#allocation7 + $0x38] sm:$0xff] }
  0xbe   :  { %v209_v42 = vadd.s32 536870912, %v208_v41  ;;  %522 = vmatpush.msra.mxu2 %v511_v37 }
  0xc0   :  { %v210_v43 = vshrl.u32 %v209_v42, 30  ;;  %523 = vmatpush.msra.mxu2 %v510_v0  ;;  %v504_v42 = vld [vmem:[#allocation7 + $0x28] sm:$0xff] }
  0xc2   :  { %v211_v44 = vshll.u32 %v210_v43, 30  ;;  %v234_v1 = vsub.s32 4, %v210_v43  ;;  %524 = vmatpush.msra.mxu2 %v509_v38 }
  0xc4   :  { %v212_v45 = vsub.s32 %v208_v41, %v211_v44  ;;  %v235_v6 = vsel %vm112_vm12, %v234_v1, %v210_v43  ;;  %525 = vmatpush.msra.mxu2 %v508_v39  ;;  %v505_v41 = vld [vmem:[#allocation7 + $0x30] sm:$0xff]  ;;  %v503_v43 = vld [vmem:[#allocation7 + $0x20] sm:$0xff]  ;;  %v502_v44 = vld [vmem:[#allocation7 + $0x18] sm:$0xff] }
  0xc5   :  { %v237_v9 = vsel %vm111_vm13, 0, %v235_v6  ;;  %v546_v1 = vld [vmem:[#allocation8 + $0x38] sm:$0xff]  ;;  %v543_v6 = vld [vmem:[#allocation8 + $0x20] sm:$0xff] }
  0xc6   :  { %vm213_vm10 = vcmp.lt.s32.totalorder %v212_v45, 0  ;;  %v214_v47 = vsub.s32 0, %v212_v45  ;;  %v254_v14 = vadd.s32 3, %v237_v9  ;;  %v409_v20 = vand.u32 3, %v237_v9 }
  0xc8   :  { %v215_v48 = vsel %vm213_vm10, %v214_v47, %v212_v45  ;;  %v255_v21 = vand.u32 3, %v254_v14  ;;  %vm410_vm14 = vcmp.lt.s32.totalorder %v409_v20, 2  ;;  %vm411_vm15 = vcmp.eq.s32.totalorder %v409_v20, 0 }
  0xc9   :  { %v216_v49 = vclz %v215_v48  ;;  %vm414_vm0 = vcmp.eq.s32.totalorder %v409_v20, 2  ;;  %v539_v20 = vld [vmem:[#allocation8] sm:$0xff] }
  0xca   :  { %vm256_vm2 = vcmp.lt.s32.totalorder %v255_v21, 2  ;;  %vm257_vm3 = vcmp.eq.s32.totalorder %v255_v21, 0  ;;  %vm260_vm4 = vcmp.eq.s32.totalorder %v255_v21, 2  ;;  %v643_v21 = vld [vmem:[%s942_s6] ss:$0 sm:$0xff]  ;;  %s796_s6 = smov [#allocation10]  }
  0xcb   :  { %v619_v50 = vadd.s32 4294967294, %v216_v49  ;;  %v501_v49 = vld [vmem:[#allocation7 + $0x10] sm:$0xff]  ;;  %s604_s13 = sshll.u32 %s796_s6, 4  ;;  %s605_s13 = int_to_ptr.vmem [resolvable:$true] %s604_s13 }
  0xcd   :  { %vm620_vm11 = vcmp.lt.s32.totalorder %v619_v50, 0 }
  0xce   :  { %v219_v26 = vsel %vm620_vm11, 0, %v619_v50 }
  0xcf   :  { %v220_v52 = vsub.s32 32, %v219_v26  ;;  %v224_v53 = vsub.s32 4294967266, %v219_v26  ;;  %v221_v54 = vshll.u32 %v212_v45, %v219_v26  ;;  %v642_v45 = vld [vmem:[%s940_s4] ss:$0 sm:$0xff]  ;;  %v500_v26 = vld [vmem:[#allocation7 + $0x8] sm:$0xff] }
  0xd1   :  { %v222_v55 = vshrl.u32 %v204_v51, %v220_v52  ;;  %v225_v46 = vadd.s32 127, %v224_v53  ;;  %v499_v52 = vld [vmem:[#allocation7] sm:$0xff] }
  0xd3   :  { %v223_v56 = vor.u32 %v222_v55, %v221_v54  ;;  %v226_v57 = vshll.u32 %v225_v46, 23  ;;  %v554_v54 = vld [vmem:[#allocation8 + $0x78] sm:$0xff]  ;;  %v553_v55 = vld [vmem:[#allocation8 + $0x70] sm:$0xff] }
  0xd4   :  { %559 = vmatpush.msra.mxu3 %v554_v54 }
  0xd5   :  { %v227_v58 = vor.u32 4788187, %v226_v57  ;;  %v230_v60 = vcvt.s32.f32 %v223_v56  ;;  %v552_v56 = vld [vmem:[#allocation8 + $0x68] sm:$0xff]  ;;  %v551_v57 = vld [vmem:[#allocation8 + $0x60] sm:$0xff] }
  0xd6   :  { %560 = vmatpush.msra.mxu3 %v553_v55 }
  0xd7   :  { %v228_v59 = vand.u32 2147483647, %v227_v58  ;;  %v550_v58 = vld [vmem:[#allocation8 + $0x58] sm:$0xff] }
  0xd8   :  { %561 = vmatpush.msra.mxu3 %v552_v56 }
  0xd9   :  { %v231_v61 = vmul.f32 %v230_v60, %v228_v59  ;;  %v549_v59 = vld [vmem:[#allocation8 + $0x50] sm:$0xff] }
  0xda   :  { %562 = vmatpush.msra.mxu3 %v551_v57 }
  0xdb   :  { %v232_v62 = vxor.u32 2147483648, %v231_v61 }
  0xdc   :  { %563 = vmatpush.msra.mxu3 %v550_v58 }
  0xdd   :  { %v233_v63 = vsel %vm112_vm12, %v232_v62, %v231_v61  ;;  %v548_v61 = vld [vmem:[#allocation8 + $0x48] sm:$0xff] }
  0xde   :  { %v236_v2 = vsel %vm111_vm13, %v866_v15, %v233_v63  ;;  %v507_v15 = vld [vmem:[#allocation7 + $0x40] sm:$0xff]  ;;  %564 = vmatpush.msra.mxu3 %v549_v59 }
  0xdf   :  { %v238_v3 = vmul.f32 %v236_v2, %v236_v2  ;;  %526 = vmatpush.msra.mxu2 %v507_v15  ;;  %v547_v63 = vld [vmem:[#allocation8 + $0x40] sm:$0xff] }
  0xe0   :  { %565 = vmatpush.msra.mxu3 %v548_v61 }
  0xe1   :  { %v239_v4 = vmul.f32 -0.001358992, %v238_v3  ;;  %v246_v5 = vmul.f32 -0.00019511016, %v238_v3  ;;  %527 = vmatpush.msra.mxu2 %v506_v40 }
  0xe2   :  { %566 = vmatpush.msra.mxu3 %v547_v63 }
  0xe3   :  { %v240_v7 = vadd.f32 0.041655596, %v239_v4  ;;  %v247_v8 = vadd.f32 0.008332121, %v246_v5  ;;  %528 = vmatpush.msra.mxu2 %v505_v41 }
  0xe4   :  { %567 = vmatpush.msra.mxu3 %v546_v1 }
  0xe5   :  { %v241_v10 = vmul.f32 %v240_v7, %v238_v3  ;;  %v248_v11 = vmul.f32 %v247_v8, %v238_v3  ;;  %529 = vmatpush.msra.mxu2 %v504_v42  ;;  %v542_v8 = vld [vmem:[#allocation8 + $0x18] sm:$0xff] }
  0xe7   :  { %v242_v12 = vadd.f32 -0.4999988, %v241_v10  ;;  %v249_v13 = vadd.f32 -0.16666654, %v248_v11  ;;  %530 = vmatpush.msra.mxu2 %v503_v43 }
  0xe9   :  { %v243_v16 = vmul.f32 %v242_v12, %v238_v3  ;;  %v250_v17 = vmul.f32 %v249_v13, %v238_v3  ;;  %531 = vmatpush.msra.mxu2 %v502_v44  ;;  %v544_v3 = vld [vmem:[#allocation8 + $0x28] sm:$0xff]  ;;  %v541_v12 = vld [vmem:[#allocation8 + $0x10] sm:$0xff] }
  0xeb   :  { %v244_v18 = vadd.f32 1.0, %v243_v16  ;;  %v251_v19 = vadd.f32 1.0, %v250_v17  ;;  %532 = vmatpush.msra.mxu2 %v501_v49 }
  0xed   :  { %v252_v22 = vmul.f32 %v251_v19, %v236_v2  ;;  %v261_v23 = vxor.u32 2147483648, %v244_v18  ;;  %533 = vmatpush.msra.mxu2 %v500_v26  ;;  %v545_v2 = vld [vmem:[#allocation8 + $0x30] sm:$0xff]  ;;  %v540_v19 = vld [vmem:[#allocation8 + $0x8] sm:$0xff] }
  0xee   :  { %568 = vmatpush.msra.mxu3 %v545_v2 }
  0xef   :  { %v258_v25 = vxor.u32 2147483648, %v252_v22  ;;  %v416_v28 = vsel %vm414_vm0, %v261_v23, %v252_v22  ;;  %v262_v30 = vsel %vm260_vm4, %v261_v23, %v252_v22  ;;  %534 = vmatpush.msra.mxu2 %v499_v52 }
  0xf0   :  { %569 = vmatpush.msra.mxu3 %v544_v3 }
  0xf1   :  { %v413_v27 = vsel %vm411_vm15, %v244_v18, %v258_v25  ;;  %v259_v29 = vsel %vm257_vm3, %v244_v18, %v258_v25  ;;  %v644_v25 = vld [vmem:[%s944_s8] ss:$0 sm:$0xff]  ;;  %s606_s8 = sshll.u32 %s945_s9, 4  ;;  %s607_s8 = int_to_ptr.hbm [resolvable:$true] %s606_s8 }
  0xf2   :  { %v417_v31 = vsel %vm410_vm14, %v413_v27, %v416_v28  ;;  %v263_v32 = vsel %vm256_vm2, %v259_v29, %v262_v30  ;;  %570 = vmatpush.msra.mxu3 %v543_v6 }
  0xf3   :  { %v418_v33 = vsel %vm253_vm5, nan, %v417_v31  ;;  %v264_v35 = vsel %vm253_vm5, nan, %v263_v32 }
  0xf4   :  { %624 = vmatmul.msk.f32.vlgmr.msra.gmra.mxu0 %vm427_vm1, %v418_v33  ;;  %625 = vmatmul.msk.f32.vlgmr.msra.gmra.mxu1 %vm427_vm1, %v264_v35 }
  0xf5   :  { %571 = vmatpush.msra.mxu3 %v542_v8 }
  0xf7   :  { %572 = vmatpush.msra.mxu3 %v541_v12 }
  0xf9   :  { %573 = vmatpush.msra.mxu3 %v540_v19 }
  0xfb   :  { %574 = vmatpush.msra.mxu3 %v539_v20 }
 0x171   :  { %v448_v47 = vpop.f32.mrf.mxu0  ;;  %v471_v48 = vpop.f32.mrf.mxu1 }
 0x172   :  { %v472_v50 = vadd.f32 %v471_v48, %v448_v47 }
 0x174   :  { %v478_v51 = vadd.f32 %v642_v45, %v472_v50 }
 0x176   :  { %v479_v53 = vsub.f32 0.0, %v478_v51 }
 0x178   :  { %v480_v46 = vmul.f32 1.442695, %v479_v53 }
 0x17a   :  { %647 = vpow2.f32 %v480_v46 }
 0x180   :  { %v648_v60 = vpop.eup %647 }
 0x181   :  { %v482_v62 = vadd.f32 1.0, %v648_v60 }
 0x183   :  { %649 = vrcp.f32 %v482_v62  ;;  %v494_v9 = vand.u32 2147483648, %v482_v62  ;;  %v492_v11 = vand.u32 2147483647, %v482_v62  ;;  %vm488_vm7 = vweird.f32 %v482_v62 }
 0x185   :  { %v495_v14 = vor.u32 1.1754944e-38, %v494_v9  ;;  %vm493_vm9 = vcmp.eq.f32.partialorder %v492_v11, 8.507059e+37 }
 0x189   :  { %v650_v4 = vpop.eup %649 }
 0x18a   :  { %v484_v5 = vmul.f32 %v650_v4, %v482_v62  ;;  %vm489_vm6 = vweird.f32 %v650_v4 }
 0x18b   :  { %vm490_vm8 = vmor %vm488_vm7, %vm489_vm6 }
 0x18c   :  { %v485_v7 = vsub.f32 1.0, %v484_v5 }
 0x18e   :  { %v486_v10 = vmul.f32 %v650_v4, %v485_v7 }
 0x190   :  { %v487_v13 = vadd.f32 %v650_v4, %v486_v10 }
 0x192   :  { %v491_v16 = vsel %vm490_vm8, %v650_v4, %v487_v13 }
 0x193   :  { %v496_v17 = vsel %vm493_vm9, %v495_v14, %v491_v16 }
 0x194   :  { %v498_v18 = vmul.f32 %v496_v17, %v478_v51 }
 0x196   :  { %535 = vmatmul.f32.vlgmr.msra.gmra.mxu2 %v498_v18 }
 0x219   :  { %v536_v22 = vpop.f32.mrf.mxu2 }
 0x21a   :  { %v537_v23 = vadd.f32 %v643_v21, %v536_v22 }
 0x21c   :  { %575 = vmatmul.f32.vlgmr.msra.gmra.mxu3 %v537_v23 }
 0x29f   :  { %v576_v27 = vpop.f32.mrf.mxu3 }
 0x2a0   :  { %v577_v28 = vadd.f32 %v644_v25, %v576_v27 }
 0x2a2   :  { %v579_v29 = vsub.f32 0.0, %v577_v28 }
 0x2a4   :  { %v580_v30 = vmul.f32 1.442695, %v579_v29 }
 0x2a6   :  { %651 = vpow2.f32 %v580_v30 }
 0x2ac   :  { %v652_v31 = vpop.eup %651 }
 0x2ad   :  { %v582_v32 = vadd.f32 1.0, %v652_v31 }
 0x2af   :  { %653 = vrcp.f32 %v582_v32  ;;  %v594_v34 = vand.u32 2147483648, %v582_v32  ;;  %v592_v37 = vand.u32 2147483647, %v582_v32  ;;  %vm588_vm11 = vweird.f32 %v582_v32 }
 0x2b1   :  { %v595_v38 = vor.u32 1.1754944e-38, %v594_v34  ;;  %vm593_vm13 = vcmp.eq.f32.partialorder %v592_v37, 8.507059e+37 }
 0x2b5   :  { %v654_v33 = vpop.eup %653 }
 0x2b6   :  { %v584_v35 = vmul.f32 %v654_v33, %v582_v32  ;;  %vm589_vm10 = vweird.f32 %v654_v33 }
 0x2b7   :  { %vm590_vm12 = vmor %vm588_vm11, %vm589_vm10 }
 0x2b8   :  { %v585_v24 = vsub.f32 1.0, %v584_v35 }
 0x2ba   :  { %v586_v36 = vmul.f32 %v654_v33, %v585_v24 }
 0x2bc   :  { %v587_v0 = vadd.f32 %v654_v33, %v586_v36 }
 0x2be   :  { %v591_v39 = vsel %vm590_vm12, %v654_v33, %v587_v0 }
 0x2bf   :  { %v596_v15 = vsel %vm593_vm13, %v595_v38, %v591_v39 }
 0x2c0   :  { %598 = vst [vmem:[#allocation10] sm:$0xff] %v596_v15 }
 0x2c1   :  { %609 = dma.vmem_to_hbm [thread:$0]  %s605_s13, 128, %s607_s8, [#allocation4]  }
 0x2c2   :  { %781 = dma.done.wait [#allocation4], 128  }
 0x2c3   :  { %782 = vsyncadd [#allocation4], 4294967168 }
 0x2c4   :  { %614 = vsyncpa [#allocation3], 1 }
 0x2c5   :  { %615 = vsyncpa [#allocation6], 1 }
 0x2c6   :  { %616 = vsyncpa [#allocation9], 1 }
 0x2c7   :  { %617 = vsyncpa [#allocation4], 1 }

</bundles_post_ra>
